<compile_context>
chip_gen: v6e
topology: v6e:2x2x1
jax: 0.10.0
libtpu: 0.0.40
codegen_flags: <defaults>
</compile_context>

<pallas_src>
import jax
import jax.numpy as jnp
import numpy as np
from jax.experimental import pallas as pl
from jax.experimental.pallas import tpu as pltpu


# ---------------------------------------------------------------------------
# Kernel
# ---------------------------------------------------------------------------
def mlp_kernel(x_ref, p_ref, o_ref):
    # x_ref: (TB, 9) in the caller's dtype (f32 or bf16); upcast once for compute.
    x = x_ref[...].astype(jnp.float32)                       # (TB, 9)

    # Packed parameters (f32, VMEM resident): rows 0:18 -> layer1, 18:27 -> layer2,
    # 27:28 -> layer3; weights in cols 0:fan_in, bias in col 18.
    w1 = p_ref[0:18, 0:9]
    b1 = p_ref[0:18, 18:19]
    w2 = p_ref[18:27, 0:18]
    b2 = p_ref[18:27, 18:19]
    w3 = p_ref[27:28, 0:9]
    b3 = p_ref[27:28, 18:19]

    # Layer 1: contract the 9-feature minor dims of both operands (A @ B^T /
    # attention-score pattern) -> feature-major (18, TB).  From here on the
    # batch rides the 128-lane axis, so all math and stores are lane-dense.
    h1 = jax.lax.dot_general(w1, x, (((1,), (1,)), ((), ())),
                             preferred_element_type=jnp.float32) + b1
    h1 = jnp.maximum(h1, 0.0)                                 # (18, TB)

    h2 = jnp.dot(w2, h1, preferred_element_type=jnp.float32) + b2
    h2 = jnp.maximum(h2, 0.0)                                 # (9, TB)

    z = jnp.dot(w3, h2, preferred_element_type=jnp.float32) + b3   # (1, TB)

    # Exact sigmoid (EUP exp + exact divide) -- the EUP/VALU have plenty of
    # slack here, so the approx reciprocal bought nothing and cost accuracy.
    o_ref[...] = 1.0 / (1.0 + jnp.exp(-z))                    # (1, TB)


# ---------------------------------------------------------------------------
# Wrapper
# ---------------------------------------------------------------------------
def _choose_tile(batch, tb):
    """Pick a batch tile: big enough to amortize the ~0.35us/step overhead,
    small enough for VMEM, and leaving >=4 grid steps so v7x's two
    TensorCores both get work."""
    if batch <= 1024:
        return batch                       # one (possibly small) block
    tb = max(128, (tb // 128) * 128)       # keep sublane/lane alignment
    while tb > 1024 and pl.cdiv(batch, tb) < 4:
        tb //= 2
    return tb


def pack_params(params):
    """Pack all weights/biases into one (28, 19) f32 VMEM-resident buffer."""
    p = jnp.zeros((28, 19), jnp.float32)
    p = p.at[0:18, 0:9].set(params["w1"])
    p = p.at[0:18, 18:19].set(params["b1"])
    p = p.at[18:27, 0:18].set(params["w2"])
    p = p.at[18:27, 18:19].set(params["b2"])
    p = p.at[27:28, 0:9].set(params["w3"])
    p = p.at[27:28, 18:19].set(params["b3"])
    return p


def neural_net_forward(x, packed_params, *, tb=16384):
    """x: (B, 9) float32 or bfloat16 (native layout, no transpose/pad needed).
    packed_params: (28, 19) f32 from pack_params(). Returns (B, 1) float32."""
    B, F = x.shape
    assert F == 9 and packed_params.shape == (28, 19)

    tb = _choose_tile(B, tb)
    grid = (pl.cdiv(B, tb),)               # ragged last tile handled by masking

    flops = 2 * B * (9 * 18 + 18 * 9 + 9 * 1)
    bytes_accessed = (x.size * x.dtype.itemsize          # activations in
                      + B * 4                            # sigmoid out
                      + packed_params.size * 4)          # params (once)

    out = pl.pallas_call(
        mlp_kernel,
        out_shape=jax.ShapeDtypeStruct((1, B), jnp.float32),
        grid=grid,
        in_specs=[
            pl.BlockSpec((tb, 9), lambda i: (i, 0)),      # batch tile (double-buffered)
            pl.BlockSpec((28, 19), lambda i: (0, 0)),     # params stay VMEM resident
        ],
        out_specs=pl.BlockSpec((1, tb), lambda i: (0, i)),  # lane-dense output stores
        compiler_params=pltpu.CompilerParams(
            dimension_semantics=("parallel",),             # shard batch across TCs (v7x)
            # (TB,9) tiles are lane-padded to 128 in VMEM: ~16 MiB double-buffered
            # f32 at TB=16384, above v5e/v6e/v7x default scoped limits but well
            # inside physical VMEM on all three generations.
            vmem_limit_bytes=40 << 20,
        ),
        cost_estimate=pl.CostEstimate(
            flops=flops, transcendentals=B, bytes_accessed=bytes_accessed),
    )(x, packed_params)

    # (1, B) -> (B, 1) is a layout-preserving bitcast reshape, not an HBM pass.
    return out.reshape(B, 1)


# ---------------------------------------------------------------------------
# Init (matches nn.Linear: weight (out, in), bias as (out, 1) column,
# uniform(-1/sqrt(fan_in), 1/sqrt(fan_in)))
# ---------------------------------------------------------------------------
def init_params(key):
    dims = [(9, 18), (18, 9), (9, 1)]
    params = {}
    for idx, (fan_in, fan_out) in enumerate(dims, start=1):
        key, kw, kb = jax.random.split(key, 3)
        bound = 1.0 / (fan_in ** 0.5)
        params[f"w{idx}"] = jax.random.uniform(
            kw, (fan_out, fan_in), jnp.float32, minval=-bound, maxval=bound)
        params[f"b{idx}"] = jax.random.uniform(
            kb, (fan_out, 1), jnp.float32, minval=-bound, maxval=bound)
    return params


if __name__ == "__main__":
    key = jax.random.PRNGKey(0)
    key, kx = jax.random.split(key)

    B = 8
    x = jax.random.normal(kx, (B, 9), dtype=jnp.float32)
    params = init_params(key)
    packed = pack_params(params)

    out = neural_net_forward(x, packed)
    out = jax.block_until_ready(out)
    assert out.shape == (B, 1)

    # Exact float64 reference on host (PyTorch semantics: y = x @ W.T + b).
    xn = np.asarray(x, dtype=np.float64)
    w1 = np.asarray(params["w1"], np.float64); b1 = np.asarray(params["b1"], np.float64)
    w2 = np.asarray(params["w2"], np.float64); b2 = np.asarray(params["b2"], np.float64)
    w3 = np.asarray(params["w3"], np.float64); b3 = np.asarray(params["b3"], np.float64)
    h1 = np.maximum(xn @ w1.T + b1.T, 0.0)
    h2 = np.maximum(h1 @ w2.T + b2.T, 0.0)
    ref = 1.0 / (1.0 + np.exp(-(h2 @ w3.T + b3.T)))

    err = float(np.max(np.abs(np.asarray(out, np.float64) - ref)))
    assert err < 5e-4, f"max abs err {err}"

    # bf16-streamed activations (halves dominant HBM input traffic); f32 accumulate.
    out_bf16 = jax.block_until_ready(
        neural_net_forward(x.astype(jnp.bfloat16), packed))
    err_bf16 = float(np.max(np.abs(np.asarray(out_bf16, np.float64) - ref)))
    assert err_bf16 < 2e-2, f"bf16 max abs err {err_bf16}"

    print("KERNEL_OK")
</pallas_src>

<mosaic_0001>
module attributes {stable_mosaic.version = 11 : i64} {
  func.func @mlp_kernel(%arg0: i32, %arg1: memref<8x9xf32, #tpu.memory_space<vmem>>, %arg2: memref<28x19xf32, #tpu.memory_space<vmem>>, %arg3: memref<1x8xf32, #tpu.memory_space<vmem>>) attributes {dimension_semantics = [#tpu.dimension_semantics<parallel>], iteration_bounds = array<i64: 1>, scalar_prefetch = 0 : i64, scratch_operands = 0 : i64, tpu.core_type = #tpu.core_type<tc>, window_params = [{transform_indices = @transform_0, window_bounds = array<i64: 8, 9>}, {pipeline_mode = #tpu.pipeline_mode<synchronous>, transform_indices = @transform_1, window_bounds = array<i64: 28, 19>}, {transform_indices = @transform_2, window_bounds = array<i64: 1, 8>}]} {
    %c0 = arith.constant 0 : index
    %c0_0 = arith.constant 0 : index
    %0 = vector.load %arg1[%c0, %c0_0] : memref<8x9xf32, #tpu.memory_space<vmem>>, vector<8x9xf32>
    %c0_1 = arith.constant 0 : index
    %c0_2 = arith.constant 0 : index
    %1 = vector.load %arg2[%c0_1, %c0_2] : memref<28x19xf32, #tpu.memory_space<vmem>>, vector<18x9xf32>
    %c0_3 = arith.constant 0 : index
    %c18 = arith.constant 18 : index
    %2 = vector.load %arg2[%c0_3, %c18] : memref<28x19xf32, #tpu.memory_space<vmem>>, vector<18x1xf32>
    %c18_4 = arith.constant 18 : index
    %c0_5 = arith.constant 0 : index
    %3 = vector.load %arg2[%c18_4, %c0_5] : memref<28x19xf32, #tpu.memory_space<vmem>>, vector<9x18xf32>
    %c18_6 = arith.constant 18 : index
    %c18_7 = arith.constant 18 : index
    %4 = vector.load %arg2[%c18_6, %c18_7] : memref<28x19xf32, #tpu.memory_space<vmem>>, vector<9x1xf32>
    %c27 = arith.constant 27 : index
    %c0_8 = arith.constant 0 : index
    %5 = vector.load %arg2[%c27, %c0_8] : memref<28x19xf32, #tpu.memory_space<vmem>>, vector<1x9xf32>
    %c27_9 = arith.constant 27 : index
    %c18_10 = arith.constant 18 : index
    %6 = vector.load %arg2[%c27_9, %c18_10] : memref<28x19xf32, #tpu.memory_space<vmem>>, vector<1x1xf32>
    %cst = arith.constant dense<0.000000e+00> : vector<18x8xf32>
    %7 = tpu.matmul %1, %0, %cst {dimension_numbers = #tpu.dot_dimension_numbers<[1], [1], [0], [0], [0, 0, 1, 0], [], []>} : vector<18x9xf32>, vector<8x9xf32>, vector<18x8xf32> -> vector<18x8xf32>
    %8 = vector.broadcast %2 : vector<18x1xf32> to vector<18x8xf32>
    %9 = arith.addf %7, %8 : vector<18x8xf32>
    %cst_11 = arith.constant 0.000000e+00 : f32
    %10 = vector.broadcast %cst_11 : f32 to vector<18x8xf32>
    %11 = arith.maximumf %9, %10 : vector<18x8xf32>
    %cst_12 = arith.constant dense<0.000000e+00> : vector<9x8xf32>
    %12 = tpu.matmul %3, %11, %cst_12 {dimension_numbers = #tpu.dot_dimension_numbers<[1], [0], [0], [1], [0, 0, 1, 1], [], []>} : vector<9x18xf32>, vector<18x8xf32>, vector<9x8xf32> -> vector<9x8xf32>
    %13 = vector.broadcast %4 : vector<9x1xf32> to vector<9x8xf32>
    %14 = arith.addf %12, %13 : vector<9x8xf32>
    %cst_13 = arith.constant 0.000000e+00 : f32
    %15 = vector.broadcast %cst_13 : f32 to vector<9x8xf32>
    %16 = arith.maximumf %14, %15 : vector<9x8xf32>
    %cst_14 = arith.constant dense<0.000000e+00> : vector<1x8xf32>
    %17 = tpu.matmul %5, %16, %cst_14 {dimension_numbers = #tpu.dot_dimension_numbers<[1], [0], [0], [1], [0, 0, 1, 1], [], []>} : vector<1x9xf32>, vector<9x8xf32>, vector<1x8xf32> -> vector<1x8xf32>
    %18 = vector.broadcast %6 : vector<1x1xf32> to vector<1x8xf32>
    %19 = arith.addf %17, %18 : vector<1x8xf32>
    %cst_15 = arith.constant 0.000000e+00 : f32
    %20 = vector.broadcast %cst_15 : f32 to vector<1x8xf32>
    %21 = arith.subf %20, %19 : vector<1x8xf32>
    %22 = math.exp %21 : vector<1x8xf32>
    %cst_16 = arith.constant 1.000000e+00 : f32
    %23 = vector.broadcast %cst_16 : f32 to vector<1x8xf32>
    %24 = arith.addf %23, %22 : vector<1x8xf32>
    %cst_17 = arith.constant 1.000000e+00 : f32
    %25 = vector.broadcast %cst_17 : f32 to vector<1x8xf32>
    %26 = arith.divf %25, %24 : vector<1x8xf32>
    %c0_18 = arith.constant 0 : index
    %c0_19 = arith.constant 0 : index
    %27 = vector.load %arg3[%c0_18, %c0_19] : memref<1x8xf32, #tpu.memory_space<vmem>>, vector<1x8xf32>
    tpu.vector_store %arg3[%c0_18, %c0_19], %26 {strides = array<i32>} : memref<1x8xf32, #tpu.memory_space<vmem>>, vector<1x8xf32>,
    return
  }
  func.func @transform_0(%arg0: i32) -> (i32, i32) {
    %c0_i32 = arith.constant 0 : i32
    %c0_i32_0 = arith.constant 0 : i32
    return %arg0, %c0_i32 : i32, i32
  }
  func.func @transform_1(%arg0: i32) -> (i32, i32) {
    %c0_i32 = arith.constant 0 : i32
    %c0_i32_0 = arith.constant 0 : i32
    %c0_i32_1 = arith.constant 0 : i32
    return %c0_i32, %c0_i32_0 : i32, i32
  }
  func.func @transform_2(%arg0: i32) -> (i32, i32) {
    %c0_i32 = arith.constant 0 : i32
    %c0_i32_0 = arith.constant 0 : i32
    return %c0_i32, %arg0 : i32, i32
  }
}

</mosaic_0001>

<bundles_post_ra>
// kernel: tpu_custom_call.1
= control target key start
LH: loop header
LB: loop body
LE: loop exit
PB: predicated region body
PF: predicated region fallthrough
CT: control target
= control target key end

     0   :  { %vm34_vm0 = vcmask 72704   ;;  %v406_v1 = vmov 0.0   ;;  %vm407_vm1 = vmmov 0   ;;  %v408_v4 = vmov 18   ;;  %s467_s0 = inlined_call_operand.vmem [shape: f32[8,9], index: 0, kind: input, shape index: {}]   ;;  %s468_s1 = inlined_call_operand.vmem [shape: f32[28,19], index: 1, kind: input, shape index: {}]   ;;  %s469_s2 = inlined_call_operand.hbm [shape: f32[1,8], index: 2, kind: output, shape index: {}]  }
   0x1   :  { %v12_v0 = vld [vmem:[%s467_s0] sm:$0xff]  ;;  %347 = vmatprep.subr.mxu0 %v406_v1  ;;  %349 = vmatprep.mubr.msk.f32.mxu0 %vm407_vm1, %v406_v1  ;;  %v15_v3 = vld [vmem:[%s468_s1 + $0x10] sm:$0x3] }
   0x2   :  { %348 = vmatpush3.xpose.msk.msra.mxu0 %vm34_vm0, %v12_v0  ;;  %v13_v2 = vld [vmem:[%s468_s1] sm:$0xff]  ;;  %378 = vset.pattern.permute.xlu0 %v408_v4 }
   0x3   :  { %7 = vsyncpa [#allocation3], 0  ;;  %31 = vperm.xlu0 %378, %v15_v3   ;;  %379 = vset.pattern.permute.xlu1 %v408_v4  ;;  %v17_v5 = vld [vmem:[%s468_s1 + $0x1a] sm:$0x1]  ;;  %v14_v6 = vld [vmem:[%s468_s1 + $0x8] sm:$0xff]  ;;  %vm137_vm2 = vcmask 146432  }
   0x4   :  { %21 = vperm.xlu1 %379, %v13_v2   ;;  %v16_v7 = vld [vmem:[%s468_s1 + $0x12] sm:$0xff]  ;;  %v18_v8 = vld [vmem:[%s468_s1 + $0x1b] sm:$0x1]  ;;  %vm142_vm3 = vcmask 1041408   ;;  %vm230_vm4 = vcmask 1040384   ;;  %s409_s1 = smov [#allocation2]  }
   0x5   :  { %350 = vmatmul.mubr.msk.f32.vlgmr.msra.gmra.mxu0 %vm34_vm0, %v13_v2  ;;  %364 = vmatprep.mubr.msk.f32.mxu1 %vm137_vm2, %v16_v7  ;;  %s318_s22 = sshll.u32 %s409_s1, 4  ;;  %vm310_vm5 = vcmask 57344   ;;  %s319_s22 = int_to_ptr.vmem [resolvable:$true] %s318_s22 }
   0x6   :  { %352 = vmatprep.mubr.msk.f32.mxu0 %vm407_vm1, %v406_v1  ;;  %s384_s23 = scalar_lea.vmem %s319_s22, 16  ;;  %s388_s24 = scalar_lea.vmem %s319_s22, 32 }
   0x7   :  { %26 = vperm.xlu0 %378, %v14_v6   ;;  %p385_p0 = scmp.ne.s32.totalorder %s319_s22, %s384_s23  ;;  %p389_p1 = scmp.lt.s32.totalorder %s319_s22, %s319_s22 }
   0x8   :  { %134 = vperm.xlu1 %379, %v17_v5   ;;  %p390_p2 = scmp.lt.s32.totalorder %s388_s24, %s384_s23 }
   0x9   :  { %353 = vmatmul.mubr.msk.f32.gmra.mxu0 %vm34_vm0, %v14_v6 }
   0xa   :  { %355 = vmatprep.mubr.msk.f32.mxu0 %vm407_vm1, %v406_v1  ;;  %p391_p3 = por %p390_p2, %p389_p1 }
   0xb   :  { %129 = vperm.xlu0 %378, %v16_v7  }
   0xc   :  { %225 = vperm.xlu1 %379, %v18_v8   ;;  %p392_p4 = pnand %p391_p3, %p385_p0 }
   0xd   :  { %356 = vmatmul.mubr.msk.f32.gmra.mxu0 %vm34_vm0, %v15_v3 }
  0x7e   :  { %v32_v10 = vpop.permute.xlu0 %31 }
  0x7f   :  { %v22_v14 = vpop.permute.xlu1 %21 }
  0x82   :  { %v27_v15 = vpop.permute.xlu0 %26 }
  0x83   :  { %v135_v24 = vpop.permute.xlu1 %134 }
  0x86   :  { %v130_v27 = vpop.permute.xlu0 %129 }
  0x87   :  { %v226_v32 = vpop.permute.xlu1 %225 }
  0xc5   :  { %v110_v9 = vpop.f32.mrf.mxu0 }
  0xc6   :  { %v111_v20 = vadd.f32 %v110_v9, %v22_v14 }
  0xc7   :  { %v351_v11 = vpop.f32.mrf.mxu0 }
  0xc8   :  { %v124_v23 = vmax.f32 %v111_v20, 0.0 }
  0xc9   :  { %v115_v12 = vpop.f32.mrf.mxu0 }
  0xca   :  { %v116_v17 = vadd.f32 %v115_v12, %v27_v15 }
  0xcb   :  { %v354_v13 = vpop.f32.mrf.mxu0 }
  0xcc   :  { %v125_v22 = vmax.f32 %v116_v17, 0.0 }
  0xcd   :  { %v120_v16 = vpop.f32.mrf.mxu0 }
  0xce   :  { %v121_v18 = vadd.f32 %v120_v16, %v32_v10 }
  0xcf   :  { %v357_v19 = vpop.f32.mrf.mxu0 }
  0xd0   :  { %v126_v21 = vmax.f32 %v121_v18, 0.0 }
  0xd2   :  { %358 = vmatprep.subr.msk.mxu1 %vm142_vm3, %v126_v21 }
  0xd3   :  { %359 = vmatpush3.msk.msra.mxu1 %vm142_vm3, %v126_v21 }
  0xd4   :  { %360 = vmatprep.subr.mxu1 %v125_v22 }
  0xd5   :  { %361 = vmatpush3.msra.mxu1 %v125_v22 }
  0xd6   :  { %362 = vmatprep.subr.mxu1 %v124_v23 }
  0xd7   :  { %363 = vmatpush3.msra.mxu1 %v124_v23 }
  0xd8   :  { %365 = vmatmul.mubr.msk.f32.vlgmr.msra.gmra.mxu1 %vm137_vm2, %v17_v5  ;;  %367 = vmatprep.subr.mxu1 %v406_v1 }
  0xd9   :  { %371 = vmatprep.mubr.msk.f32.mxu1 %vm407_vm1, %v406_v1 }
 0x198   :  { %v366_v25 = vpop.f32.mrf.mxu1 }
 0x199   :  { %v218_v26 = vadd.f32 %v366_v25, %v135_v24 }
 0x19a   :  { %v212_v28 = vpop.f32.mrf.mxu1 }
 0x19b   :  { %v222_v29 = vmax.f32 %v218_v26, 0.0  ;;  %v213_v30 = vadd.f32 %v212_v28, %v130_v27 }
 0x19d   :  { %v221_v31 = vmax.f32 %v213_v30, 0.0  ;;  %368 = vmatpush3.msk.msra.mxu1 %vm230_vm4, %v222_v29 }
 0x19e   :  { %369 = vmatprep.subr.mxu1 %v406_v1 }
 0x19f   :  { %370 = vmatpush3.msra.mxu1 %v221_v31 }
 0x1a0   :  { %372 = vmatmul.mubr.msk.f32.vlgmr.msra.gmra.mxu1 %vm34_vm0, %v18_v8 }
 0x260   :  { %v300_v33 = vpop.f32.mrf.mxu1 }
 0x261   :  { %v301_v34 = vadd.f32 %v300_v33, %v226_v32 }
 0x262   :  { %v373_v35 = vpop.f32.mrf.mxu1 }
 0x263   :  { %v304_v36 = vsub.f32 0.0, %v301_v34 }
 0x265   :  { %v305_v37 = vmul.f32 1.442695, %v304_v36 }
 0x267   :  { %380 = vpow2.f32 %v305_v37 }
 0x274   :  { %v381_v38 = vpop.eup %380 }
 0x275   :  { %v307_v39 = vadd.f32 1.0, %v381_v38 }
 0x277   :  { %382 = vrcp.f32 %v307_v39 }
 0x284   :  { %v383_v40 = vpop.eup %382 }
 0x285   :  { %311 = vst.msk [vmem:[#allocation2] sm:$0x1] %vm310_vm5, %v383_v40 }
 0x286   :  { %395 = shalt.err (!%p392_p4)
}
 0x287   :  { %321 = dma.vmem_to_hbm [thread:$0]  %s319_s22, 16, %s469_s2, [#allocation3]  }
 0x288   :  { %404 = dma.done.wait [#allocation3], 16  }
 0x289   :  { %405 = vsyncadd [#allocation3], 4294967280 }
 0x28a   :  { %325 = vsyncpa [#allocation3], 1 }

</bundles_post_ra>
